<compile_context>
chip_gen: v6e
topology: v6e:2x2x1
jax: 0.10.0
libtpu: 0.0.40
codegen_flags: <defaults>
</compile_context>

<pallas_src>
import functools
import math

import jax
import jax.numpy as jnp
from jax.experimental import pallas as pl
from jax.experimental.pallas import tpu as pltpu


def _gelu_new(x):
    # HF "gelu_new": 0.5 * x * (1 + tanh(sqrt(2/pi) * (x + 0.044715 * x**3)))
    c = math.sqrt(2.0 / math.pi)
    return 0.5 * x * (1.0 + jnp.tanh(c * (x + 0.044715 * x * x * x)))


def _round_up(x, m):
    return ((x + m - 1) // m) * m


def _mlp_kernel(x_ref, w1_ref, b1_ref, w2_ref, b2_ref, o_ref, acc_ref):
    # x_ref : (tm, Dp)   w1_ref : (Dp, tf)   b1_ref : (1, tf)
    # w2_ref: (tf, Dp)   b2_ref : (1, Dp)    o_ref  : (tm, Dp)
    # acc_ref: (tm, Dp) f32 scratch, resident across the F axis.
    f = pl.program_id(1)

    @pl.when(f == 0)
    def _():
        # Fold b_out into the accumulator init (done once per M tile).
        acc_ref[...] = jnp.broadcast_to(
            b2_ref[...].astype(jnp.float32), acc_ref.shape)

    # fc_in partial tile: native-dtype operands, f32 accumulate on the MXU.
    h = jnp.dot(x_ref[...], w1_ref[...], preferred_element_type=jnp.float32)
    h = h + b1_ref[...].astype(jnp.float32)

    # gelu_new in f32 on the VPU/EUP, then back to the operand dtype for the
    # second MXU pass.
    a = _gelu_new(h).astype(w2_ref.dtype)

    # fc_out partial tile, accumulated in f32.
    acc_ref[...] += jnp.dot(a, w2_ref[...], preferred_element_type=jnp.float32)

    @pl.when(f == pl.num_programs(1) - 1)
    def _():
        o_ref[...] = acc_ref[...].astype(o_ref.dtype)


@functools.partial(jax.jit, static_argnames=("block_m", "block_f"))
def newgpt_mlp(hidden_states, w_in, b_in, w_out, b_out, *,
               block_m=256, block_f=512):
    """hidden_states: (B, S, D). w_in: (D, F), b_in: (F,), w_out: (F, D), b_out: (D,)."""
    B, S, D = hidden_states.shape
    F = w_in.shape[1]
    M = B * S
    dtype = hidden_states.dtype

    # --- padding so blocks are lane-dense (last dim mult of 128, sublane mult
    # --- of 8) and tile sizes divide the padded extents.
    D_pad = _round_up(D, 128)
    F_pad = _round_up(F, 128)

    tm = min(block_m, _round_up(M, 8))
    M_pad = _round_up(M, tm)

    tf = min(block_f, F_pad)
    while F_pad % tf != 0:      # F_pad is a multiple of 128, so this terminates.
        tf -= 128

    x2d = hidden_states.reshape(M, D)
    if (M_pad, D_pad) != (M, D):
        x2d = jnp.pad(x2d, ((0, M_pad - M), (0, D_pad - D)))
    w1p = jnp.pad(w_in, ((0, D_pad - D), (0, F_pad - F))) if (D_pad, F_pad) != (D, F) else w_in
    w2p = jnp.pad(w_out, ((0, F_pad - F), (0, D_pad - D))) if (D_pad, F_pad) != (D, F) else w_out
    b1p = jnp.pad(b_in, (0, F_pad - F)).reshape(1, F_pad)
    b2p = jnp.pad(b_out, (0, D_pad - D)).reshape(1, D_pad)

    grid = (M_pad // tm, F_pad // tf)

    # --- VMEM budget estimate (double buffers for streamed blocks + scratch).
    isz = jnp.dtype(dtype).itemsize
    wsz = jnp.dtype(w1p.dtype).itemsize
    est = (
        2 * tm * D_pad * isz            # x tile (double buffered)
        + 2 * tm * D_pad * isz          # out tile
        + 2 * D_pad * tf * wsz          # W1 tile
        + 2 * tf * D_pad * wsz          # W2 tile
        + 2 * tf * wsz + 2 * D_pad * wsz  # biases
        + tm * D_pad * 4                # f32 accumulator scratch
    )
    vmem_limit = min(max(int(est * 1.5), 32 * 1024 * 1024), 100 * 1024 * 1024)

    out_padded = pl.pallas_call(
        _mlp_kernel,
        out_shape=jax.ShapeDtypeStruct((M_pad, D_pad), dtype),
        grid_spec=pltpu.PrefetchScalarGridSpec(
            num_scalar_prefetch=0,
            grid=grid,
            in_specs=[
                pl.BlockSpec((tm, D_pad), lambda i, f: (i, 0)),   # x tile
                pl.BlockSpec((D_pad, tf), lambda i, f: (0, f)),   # W1 F-tile
                pl.BlockSpec((1, tf),     lambda i, f: (0, f)),   # b_in F-tile
                pl.BlockSpec((tf, D_pad), lambda i, f: (f, 0)),   # W2 F-tile
                pl.BlockSpec((1, D_pad),  lambda i, f: (0, 0)),   # b_out
            ],
            out_specs=pl.BlockSpec((tm, D_pad), lambda i, f: (i, 0)),
            scratch_shapes=[pltpu.VMEM((tm, D_pad), jnp.float32)],
        ),
        compiler_params=pltpu.CompilerParams(
            dimension_semantics=("parallel", "arbitrary"),
            vmem_limit_bytes=vmem_limit,
        ),
    )(x2d, w1p, b1p, w2p, b2p)

    return out_padded[:M, :D].reshape(B, S, D)


def _reference(hidden_states, w_in, b_in, w_out, b_out):
    h = hidden_states @ w_in + b_in
    a = _gelu_new(h)
    return a @ w_out + b_out


if __name__ == "__main__":
    # Small, module-consistent shapes: config.n_embd = 32, intermediate = 4 * n_embd.
    batch, seq, n_embd = 2, 8, 32
    intermediate = 4 * n_embd  # 128

    key = jax.random.PRNGKey(0)
    kx, k1, k2, k3, k4 = jax.random.split(key, 5)

    hidden_states = jax.random.normal(kx, (batch, seq, n_embd), dtype=jnp.float32)

    # Linear parameters stored as (in_features, out_features) for row-major matmul.
    w_in = jax.random.normal(k1, (n_embd, intermediate), dtype=jnp.float32) * 0.02
    b_in = jax.random.normal(k2, (intermediate,), dtype=jnp.float32) * 0.02
    w_out = jax.random.normal(k3, (intermediate, n_embd), dtype=jnp.float32) * 0.02
    b_out = jax.random.normal(k4, (n_embd,), dtype=jnp.float32) * 0.02

    out = newgpt_mlp(hidden_states, w_in, b_in, w_out, b_out)
    out = jax.block_until_ready(out)

    ref = _reference(hidden_states, w_in, b_in, w_out, b_out)
    assert out.shape == (batch, seq, n_embd)
    assert jnp.allclose(out, ref, atol=1e-5, rtol=1e-5), "mismatch vs reference"

    print("KERNEL_OK")
</pallas_src>

<mosaic_0001>
module attributes {stable_mosaic.version = 11 : i64} {
  func.func @_mlp_kernel(%arg0: i32, %arg1: i32, %arg2: memref<16x128xf32, #tpu.memory_space<vmem>>, %arg3: memref<128x128xf32, #tpu.memory_space<vmem>>, %arg4: memref<1x128xf32, #tpu.memory_space<vmem>>, %arg5: memref<128x128xf32, #tpu.memory_space<vmem>>, %arg6: memref<1x128xf32, #tpu.memory_space<vmem>>, %arg7: memref<16x128xf32, #tpu.memory_space<vmem>>, %arg8: memref<16x128xf32, #tpu.memory_space<vmem>>) attributes {dimension_semantics = [#tpu.dimension_semantics<parallel>, #tpu.dimension_semantics<arbitrary>], iteration_bounds = array<i64: 1, 1>, scalar_prefetch = 0 : i64, scratch_operands = 1 : i64, tpu.core_type = #tpu.core_type<tc>, window_params = [{transform_indices = @transform_0, window_bounds = array<i64: 16, 128>}, {transform_indices = @transform_1, window_bounds = array<i64: 128, 128>}, {transform_indices = @transform_2, window_bounds = array<i64: 1, 128>}, {transform_indices = @transform_3, window_bounds = array<i64: 128, 128>}, {pipeline_mode = #tpu.pipeline_mode<synchronous>, transform_indices = @transform_4, window_bounds = array<i64: 1, 128>}, {transform_indices = @transform_5, window_bounds = array<i64: 16, 128>}]} {
    %c0_i32 = arith.constant 0 : i32
    %0 = arith.cmpi eq, %arg1, %c0_i32 : i32
    %1 = arith.extui %0 : i1 to i32
    %c0_i32_0 = arith.constant 0 : i32
    %2 = arith.cmpi ne, %1, %c0_i32_0 : i32
    scf.if %2 {
      %c0_19 = arith.constant 0 : index
      %c0_20 = arith.constant 0 : index
      %30 = vector.load %arg6[%c0_19, %c0_20] : memref<1x128xf32, #tpu.memory_space<vmem>>, vector<1x128xf32>
      %31 = vector.shape_cast %30 : vector<1x128xf32> to vector<1x128xf32>
      %32 = vector.broadcast %31 : vector<1x128xf32> to vector<16x128xf32>
      %c0_21 = arith.constant 0 : index
      %c0_22 = arith.constant 0 : index
      %33 = vector.load %arg8[%c0_21, %c0_22] : memref<16x128xf32, #tpu.memory_space<vmem>>, vector<16x128xf32>
      tpu.vector_store %arg8[%c0_21, %c0_22], %32 {strides = array<i32>} : memref<16x128xf32, #tpu.memory_space<vmem>>, vector<16x128xf32>,
    } else {
    }
    %c0 = arith.constant 0 : index
    %c0_1 = arith.constant 0 : index
    %3 = vector.load %arg2[%c0, %c0_1] : memref<16x128xf32, #tpu.memory_space<vmem>>, vector<16x128xf32>
    %c0_2 = arith.constant 0 : index
    %c0_3 = arith.constant 0 : index
    %4 = vector.load %arg3[%c0_2, %c0_3] : memref<128x128xf32, #tpu.memory_space<vmem>>, vector<128x128xf32>
    %cst = arith.constant dense<0.000000e+00> : vector<16x128xf32>
    %5 = tpu.matmul %3, %4, %cst {dimension_numbers = #tpu.dot_dimension_numbers<[1], [0], [0], [1], [0, 0, 1, 1], [], []>} : vector<16x128xf32>, vector<128x128xf32>, vector<16x128xf32> -> vector<16x128xf32>
    %c0_4 = arith.constant 0 : index
    %c0_5 = arith.constant 0 : index
    %6 = vector.load %arg4[%c0_4, %c0_5] : memref<1x128xf32, #tpu.memory_space<vmem>>, vector<1x128xf32>
    %7 = vector.broadcast %6 : vector<1x128xf32> to vector<16x128xf32>
    %8 = arith.addf %5, %7 : vector<16x128xf32>
    %cst_6 = arith.constant 5.000000e-01 : f32
    %9 = vector.broadcast %cst_6 : f32 to vector<16x128xf32>
    %10 = arith.mulf %9, %8 : vector<16x128xf32>
    %cst_7 = arith.constant 4.471500e-02 : f32
    %11 = vector.broadcast %cst_7 : f32 to vector<16x128xf32>
    %12 = arith.mulf %11, %8 : vector<16x128xf32>
    %13 = arith.mulf %12, %8 : vector<16x128xf32>
    %14 = arith.mulf %13, %8 : vector<16x128xf32>
    %15 = arith.addf %8, %14 : vector<16x128xf32>
    %cst_8 = arith.constant 0.797884583 : f32
    %16 = vector.broadcast %cst_8 : f32 to vector<16x128xf32>
    %17 = arith.mulf %16, %15 : vector<16x128xf32>
    %18 = math.tanh %17 : vector<16x128xf32>
    %cst_9 = arith.constant 1.000000e+00 : f32
    %19 = vector.broadcast %cst_9 : f32 to vector<16x128xf32>
    %20 = arith.addf %19, %18 : vector<16x128xf32>
    %21 = arith.mulf %10, %20 : vector<16x128xf32>
    %c0_10 = arith.constant 0 : index
    %c0_11 = arith.constant 0 : index
    %22 = vector.load %arg8[%c0_10, %c0_11] : memref<16x128xf32, #tpu.memory_space<vmem>>, vector<16x128xf32>
    %c0_12 = arith.constant 0 : index
    %c0_13 = arith.constant 0 : index
    %23 = vector.load %arg5[%c0_12, %c0_13] : memref<128x128xf32, #tpu.memory_space<vmem>>, vector<128x128xf32>
    %cst_14 = arith.constant dense<0.000000e+00> : vector<16x128xf32>
    %24 = tpu.matmul %21, %23, %cst_14 {dimension_numbers = #tpu.dot_dimension_numbers<[1], [0], [0], [1], [0, 0, 1, 1], [], []>} : vector<16x128xf32>, vector<128x128xf32>, vector<16x128xf32> -> vector<16x128xf32>
    %25 = arith.addf %22, %24 : vector<16x128xf32>
    %c0_15 = arith.constant 0 : index
    %c0_16 = arith.constant 0 : index
    %26 = vector.load %arg8[%c0_15, %c0_16] : memref<16x128xf32, #tpu.memory_space<vmem>>, vector<16x128xf32>
    tpu.vector_store %arg8[%c0_15, %c0_16], %25 {strides = array<i32>} : memref<16x128xf32, #tpu.memory_space<vmem>>, vector<16x128xf32>,
    %c0_i32_17 = arith.constant 0 : i32
    %27 = arith.cmpi eq, %arg1, %c0_i32_17 : i32
    %28 = arith.extui %27 : i1 to i32
    %c0_i32_18 = arith.constant 0 : i32
    %29 = arith.cmpi ne, %28, %c0_i32_18 : i32
    scf.if %29 {
      %c0_19 = arith.constant 0 : index
      %c0_20 = arith.constant 0 : index
      %30 = vector.load %arg8[%c0_19, %c0_20] : memref<16x128xf32, #tpu.memory_space<vmem>>, vector<16x128xf32>
      %c0_21 = arith.constant 0 : index
      %c0_22 = arith.constant 0 : index
      %31 = vector.load %arg7[%c0_21, %c0_22] : memref<16x128xf32, #tpu.memory_space<vmem>>, vector<16x128xf32>
      tpu.vector_store %arg7[%c0_21, %c0_22], %30 {strides = array<i32>} : memref<16x128xf32, #tpu.memory_space<vmem>>, vector<16x128xf32>,
    } else {
    }
    return
  }
  func.func @transform_0(%arg0: i32, %arg1: i32) -> (i32, i32) {
    %c0_i32 = arith.constant 0 : i32
    %c0_i32_0 = arith.constant 0 : i32
    return %arg0, %c0_i32 : i32, i32
  }
  func.func @transform_1(%arg0: i32, %arg1: i32) -> (i32, i32) {
    %c0_i32 = arith.constant 0 : i32
    %c0_i32_0 = arith.constant 0 : i32
    return %c0_i32, %arg1 : i32, i32
  }
  func.func @transform_2(%arg0: i32, %arg1: i32) -> (i32, i32) {
    %c0_i32 = arith.constant 0 : i32
    %c0_i32_0 = arith.constant 0 : i32
    return %c0_i32, %arg1 : i32, i32
  }
  func.func @transform_3(%arg0: i32, %arg1: i32) -> (i32, i32) {
    %c0_i32 = arith.constant 0 : i32
    %c0_i32_0 = arith.constant 0 : i32
    return %arg1, %c0_i32 : i32, i32
  }
  func.func @transform_4(%arg0: i32, %arg1: i32) -> (i32, i32) {
    %c0_i32 = arith.constant 0 : i32
    %c0_i32_0 = arith.constant 0 : i32
    %c0_i32_1 = arith.constant 0 : i32
    return %c0_i32, %c0_i32_0 : i32, i32
  }
  func.func @transform_5(%arg0: i32, %arg1: i32) -> (i32, i32) {
    %c0_i32 = arith.constant 0 : i32
    %c0_i32_0 = arith.constant 0 : i32
    return %arg0, %c0_i32 : i32, i32
  }
}

</mosaic_0001>

<bundles_post_ra>
// kernel: newgpt_mlp.1
= control target key start
LH: loop header
LB: loop body
LE: loop exit
PB: predicated region body
PF: predicated region fallthrough
CT: control target
= control target key end

     0   :  { %s515_s1 = inlined_call_operand.vmem [shape: f32[128,128], index: 1, kind: input, shape index: {}]   ;;  %s516_s0 = inlined_call_operand.vmem [shape: f32[16,128], index: 0, kind: input, shape index: {}]   ;;  %s517_s3 = inlined_call_operand.vmem [shape: f32[128,128], index: 3, kind: input, shape index: {}]   ;;  %s518_s2 = inlined_call_operand.vmem [shape: f32[1,128], index: 2, kind: input, shape index: {}]   ;;  %s519_s4 = inlined_call_operand.vmem [shape: f32[1,128], index: 4, kind: input, shape index: {}]   ;;  %s520_s5 = inlined_call_operand.vmem [shape: f32[16,128], index: 5, kind: output, shape index: {}]  }
   0x1   :  { %v50_v0 = vld [vmem:[%s515_s1 + $0x78] sm:$0xff]  ;;  %v49_v1 = vld [vmem:[%s515_s1 + $0x70] sm:$0xff]  ;;  %v48_v2 = vld [vmem:[%s515_s1 + $0x68] sm:$0xff] }
   0x2   :  { %297 = vmatprep.subr.mxu0 %v50_v0  ;;  %v47_v3 = vld [vmem:[%s515_s1 + $0x60] sm:$0xff]  ;;  %v46_v5 = vld [vmem:[%s515_s1 + $0x58] sm:$0xff]  ;;  %v45_v6 = vld [vmem:[%s515_s1 + $0x50] sm:$0xff] }
   0x3   :  { %298 = vmatpush3.msra.mxu0 %v50_v0  ;;  %v33_v4 = vld [vmem:[%s516_s0] sm:$0xff]  ;;  %v44_v7 = vld [vmem:[%s515_s1 + $0x48] sm:$0xff]  ;;  %v42_v9 = vld [vmem:[%s515_s1 + $0x38] sm:$0xff] }
   0x4   :  { %299 = vmatprep.subr.mxu0 %v49_v1  ;;  %329 = vmatprep.mubr.f32.mxu0 %v33_v4  ;;  %v43_v8 = vld [vmem:[%s515_s1 + $0x40] sm:$0xff]  ;;  %v41_v10 = vld [vmem:[%s515_s1 + $0x30] sm:$0xff]  ;;  %v40_v11 = vld [vmem:[%s515_s1 + $0x28] sm:$0xff] }
   0x5   :  { %300 = vmatpush3.msra.mxu0 %v49_v1  ;;  %v39_v12 = vld [vmem:[%s515_s1 + $0x20] sm:$0xff]  ;;  %v38_v13 = vld [vmem:[%s515_s1 + $0x18] sm:$0xff]  ;;  %v37_v14 = vld [vmem:[%s515_s1 + $0x10] sm:$0xff] }
   0x6   :  { %301 = vmatprep.subr.mxu0 %v48_v2  ;;  %v36_v15 = vld [vmem:[%s515_s1 + $0x8] sm:$0xff]  ;;  %v35_v16 = vld [vmem:[%s515_s1] sm:$0xff]  ;;  %v168_v18 = vld [vmem:[%s517_s3 + $0x78] sm:$0xff] }
   0x7   :  { %302 = vmatpush3.msra.mxu0 %v48_v2  ;;  %v34_v17 = vld [vmem:[%s516_s0 + $0x8] sm:$0xff]  ;;  %332 = vmatprep.subr.mxu1 %v168_v18  ;;  %v167_v19 = vld [vmem:[%s517_s3 + $0x70] sm:$0xff]  ;;  %v165_v21 = vld [vmem:[%s517_s3 + $0x60] sm:$0xff] }
   0x8   :  { %303 = vmatprep.subr.mxu0 %v47_v3  ;;  %333 = vmatpush3.msra.mxu1 %v168_v18  ;;  %v166_v20 = vld [vmem:[%s517_s3 + $0x68] sm:$0xff]  ;;  %v164_v22 = vld [vmem:[%s517_s3 + $0x58] sm:$0xff]  ;;  %v163_v23 = vld [vmem:[%s517_s3 + $0x50] sm:$0xff] }
   0x9   :  { %304 = vmatpush3.msra.mxu0 %v47_v3  ;;  %334 = vmatprep.subr.mxu1 %v167_v19  ;;  %v162_v24 = vld [vmem:[%s517_s3 + $0x48] sm:$0xff]  ;;  %v161_v25 = vld [vmem:[%s517_s3 + $0x40] sm:$0xff]  ;;  %v160_v26 = vld [vmem:[%s517_s3 + $0x38] sm:$0xff] }
   0xa   :  { %305 = vmatprep.subr.mxu0 %v46_v5  ;;  %335 = vmatpush3.msra.mxu1 %v167_v19  ;;  %v159_v27 = vld [vmem:[%s517_s3 + $0x30] sm:$0xff]  ;;  %v158_v28 = vld [vmem:[%s517_s3 + $0x28] sm:$0xff]  ;;  %v157_v29 = vld [vmem:[%s517_s3 + $0x20] sm:$0xff] }
   0xb   :  { %306 = vmatpush3.msra.mxu0 %v46_v5  ;;  %336 = vmatprep.subr.mxu1 %v166_v20  ;;  %v156_v30 = vld [vmem:[%s517_s3 + $0x18] sm:$0xff]  ;;  %v155_v31 = vld [vmem:[%s517_s3 + $0x10] sm:$0xff]  ;;  %v154_v32 = vld [vmem:[%s517_s3 + $0x8] sm:$0xff] }
   0xc   :  { %307 = vmatprep.subr.mxu0 %v45_v6  ;;  %337 = vmatpush3.msra.mxu1 %v166_v20  ;;  %v153_v33 = vld [vmem:[%s517_s3] sm:$0xff] }
   0xd   :  { %308 = vmatpush3.msra.mxu0 %v45_v6  ;;  %338 = vmatprep.subr.mxu1 %v165_v21  ;;  %v260_v34 = vld [vmem:[%s518_s2] ss:$0 sm:$0xff] }
   0xe   :  { %309 = vmatprep.subr.mxu0 %v44_v7  ;;  %339 = vmatpush3.msra.mxu1 %v165_v21  ;;  %v259_v57 = vld [vmem:[%s519_s4] ss:$0 sm:$0xff] }
   0xf   :  { %310 = vmatpush3.msra.mxu0 %v44_v7  ;;  %340 = vmatprep.subr.mxu1 %v164_v22 }
  0x10   :  { %311 = vmatprep.subr.mxu0 %v43_v8  ;;  %341 = vmatpush3.msra.mxu1 %v164_v22 }
  0x11   :  { %312 = vmatpush3.msra.mxu0 %v43_v8  ;;  %342 = vmatprep.subr.mxu1 %v163_v23 }
  0x12   :  { %313 = vmatprep.subr.mxu0 %v42_v9  ;;  %343 = vmatpush3.msra.mxu1 %v163_v23 }
  0x13   :  { %314 = vmatpush3.msra.mxu0 %v42_v9  ;;  %344 = vmatprep.subr.mxu1 %v162_v24 }
  0x14   :  { %315 = vmatprep.subr.mxu0 %v41_v10  ;;  %345 = vmatpush3.msra.mxu1 %v162_v24 }
  0x15   :  { %316 = vmatpush3.msra.mxu0 %v41_v10  ;;  %346 = vmatprep.subr.mxu1 %v161_v25 }
  0x16   :  { %317 = vmatprep.subr.mxu0 %v40_v11  ;;  %347 = vmatpush3.msra.mxu1 %v161_v25 }
  0x17   :  { %318 = vmatpush3.msra.mxu0 %v40_v11  ;;  %348 = vmatprep.subr.mxu1 %v160_v26 }
  0x18   :  { %319 = vmatprep.subr.mxu0 %v39_v12  ;;  %349 = vmatpush3.msra.mxu1 %v160_v26 }
  0x19   :  { %320 = vmatpush3.msra.mxu0 %v39_v12  ;;  %350 = vmatprep.subr.mxu1 %v159_v27 }
  0x1a   :  { %321 = vmatprep.subr.mxu0 %v38_v13  ;;  %351 = vmatpush3.msra.mxu1 %v159_v27 }
  0x1b   :  { %322 = vmatpush3.msra.mxu0 %v38_v13  ;;  %352 = vmatprep.subr.mxu1 %v158_v28 }
  0x1c   :  { %323 = vmatprep.subr.mxu0 %v37_v14  ;;  %353 = vmatpush3.msra.mxu1 %v158_v28 }
  0x1d   :  { %324 = vmatpush3.msra.mxu0 %v37_v14  ;;  %354 = vmatprep.subr.mxu1 %v157_v29 }
  0x1e   :  { %325 = vmatprep.subr.mxu0 %v36_v15  ;;  %355 = vmatpush3.msra.mxu1 %v157_v29 }
  0x1f   :  { %326 = vmatpush3.msra.mxu0 %v36_v15  ;;  %356 = vmatprep.subr.mxu1 %v156_v30 }
  0x20   :  { %327 = vmatprep.subr.mxu0 %v35_v16  ;;  %357 = vmatpush3.msra.mxu1 %v156_v30 }
  0x21   :  { %328 = vmatpush3.msra.mxu0 %v35_v16  ;;  %358 = vmatprep.subr.mxu1 %v155_v31 }
  0x22   :  { %330 = vmatmul.mubr.f32.vlgmr.msra.gmra.mxu0 %v34_v17  ;;  %359 = vmatpush3.msra.mxu1 %v155_v31 }
  0x23   :  { %360 = vmatprep.subr.mxu1 %v154_v32 }
  0x24   :  { %361 = vmatpush3.msra.mxu1 %v154_v32 }
  0x25   :  { %362 = vmatprep.subr.mxu1 %v153_v33 }
  0x26   :  { %363 = vmatpush3.msra.mxu1 %v153_v33 }
  0xe2   :  { %v331_v35 = vpop.f32.mrf.mxu0 }
  0xe3   :  { %v130_v36 = vadd.f32 %v331_v35, %v260_v34 }
  0xe4   :  { %v124_v37 = vpop.f32.mrf.mxu0 }
  0xe5   :  { %v136_v38 = vmul.f32 0.044715, %v130_v36  ;;  %v125_v39 = vadd.f32 %v260_v34, %v124_v37  ;;  %v134_v54 = vmul.f32 0.5, %v130_v36 }
  0xe7   :  { %v138_v40 = vmul.f32 %v136_v38, %v130_v36  ;;  %v135_v41 = vmul.f32 0.044715, %v125_v39  ;;  %v133_v52 = vmul.f32 0.5, %v125_v39 }
  0xe9   :  { %v137_v42 = vmul.f32 %v135_v41, %v125_v39  ;;  %v140_v43 = vmul.f32 %v138_v40, %v130_v36 }
  0xeb   :  { %v139_v44 = vmul.f32 %v137_v42, %v125_v39  ;;  %v142_v45 = vadd.f32 %v140_v43, %v130_v36 }
  0xed   :  { %v141_v46 = vadd.f32 %v139_v44, %v125_v39  ;;  %v144_v47 = vmul.f32 0.7978846, %v142_v45 }
  0xef   :  { %v143_v48 = vmul.f32 0.7978846, %v141_v46  ;;  %367 = vtanh.f32 %v144_v47 }
  0xf1   :  { %369 = vtanh.f32 %v143_v48 }
  0xfc   :  { %v368_v49 = vpop.eup %367 }
  0xfd   :  { %v148_v51 = vadd.f32 1.0, %v368_v49 }
  0xfe   :  { %v370_v50 = vpop.eup %369 }
  0xff   :  { %v147_v53 = vadd.f32 1.0, %v370_v50  ;;  %v150_v56 = vmul.f32 %v148_v51, %v134_v54 }
 0x101   :  { %v149_v55 = vmul.f32 %v147_v53, %v133_v52 }
 0x103   :  { %364 = vmatprep.mubr.f32.mxu1 %v149_v55 }
 0x104   :  { %365 = vmatmul.mubr.f32.vlgmr.msra.gmra.mxu1 %v150_v56 }
 0x1c4   :  { %v366_v58 = vpop.f32.mrf.mxu1 }
 0x1c5   :  { %v245_v59 = vadd.f32 %v366_v58, %v259_v57 }
 0x1c6   :  { %v235_v60 = vpop.f32.mrf.mxu1 }
 0x1c7   :  { %254 = vst [vmem:[%s520_s5 + $0x8] sm:$0xff] %v245_v59  ;;  %v244_v61 = vadd.f32 %v259_v57, %v235_v60 }
 0x1c9   :  { %253 = vst [vmem:[%s520_s5] sm:$0xff] %v244_v61 }

</bundles_post_ra>
